<compile_context>
chip_gen: v6e
topology: v6e:2x2x1
jax: 0.10.0
libtpu: 0.0.40
codegen_flags: <defaults>
</compile_context>

<pallas_src>
import jax
import jax.numpy as jnp
from jax.experimental import pallas as pl
from jax.experimental.pallas import tpu as pltpu

N_STATE = 4
N_ACTIONS = 2
FC1 = 128
HEAD_PAD = 128            # lane-dense width of the fused head / output slab

# Packed-slab row layout (all rows are HEAD_PAD = 128 lanes wide):
#   rows [0, FC1)                : fused head weights  [wa | wv | 0-pad]
#   row   FC1                    : fused head bias     [ba | bv | 0-pad]
#   rows [FC1+1, FC1+1+N_STATE)  : affine1 weights     (one row per state dim)
#   row   FC1+1+N_STATE          : affine1 bias
#   remaining rows               : zero padding to a multiple of 8 sublanes
_HB_ROW = FC1                      # 128
_W1_ROW = FC1 + 1                  # 129
_B1_ROW = FC1 + 1 + N_STATE        # 133
_SLAB_ROWS = ((_B1_ROW + 1 + 7) // 8) * 8   # 136


def policy_kernel(x_ref, slab_ref, out_ref):
    # ---- affine1 + ReLU as VPU rank-1 accumulation (K = 4 << MXU size) ----
    h = (x_ref[:, 0:1] * slab_ref[_W1_ROW:_W1_ROW + 1, :]
         + slab_ref[_B1_ROW:_B1_ROW + 1, :])
    for k in range(1, N_STATE):
        h = h + x_ref[:, k:k + 1] * slab_ref[_W1_ROW + k:_W1_ROW + k + 1, :]
    h = jnp.maximum(h, 0.0)                                      # [B_tile, FC1]

    # ---- fused head matmul: columns = [action logits | value | zeros] ----
    # slab_ref[0:FC1, :] is tile-aligned at offset 0 (first 16 (8,128) tiles).
    head = jnp.dot(h, slab_ref[0:FC1, :], preferred_element_type=jnp.float32)
    head = head + slab_ref[_HB_ROW:_HB_ROW + 1, :]               # [B_tile, 128]

    # ---- masked, numerically-stable softmax over the first N_ACTIONS lanes --
    # (Optional micro-opt once batch-bound: N_ACTIONS==2 admits a 2-lane
    #  sigmoid form; irrelevant while launch-bound, so keep the general form.)
    col = jax.lax.broadcasted_iota(jnp.int32, head.shape, 1)
    act_mask = col < N_ACTIONS
    logits = jnp.where(act_mask, head, -jnp.inf)
    m = jnp.max(logits, axis=-1, keepdims=True)
    e = jnp.exp(logits - m)                                      # masked -> 0
    inv = pl.reciprocal(jnp.sum(e, axis=-1, keepdims=True), approx=False)
    probs = e * inv

    # Lane-dense combined output: lanes [0, N_ACTIONS) = action probs,
    # lane N_ACTIONS = state value, remaining lanes = 0 (zero-padded weights).
    out_ref[...] = jnp.where(act_mask, probs, head)


def pack_params(params):
    """Pack the six Linear tensors into ONE lane-aligned [136, 128] slab.
    Done once per parameter update; amortized over every forward call."""
    w1, b1, wa, ba, wv, bv = params
    fc1 = w1.shape[1]
    assert fc1 == FC1 == HEAD_PAD, "kernel layout assumes fc1_dims == 128"

    # Fused head: [wa | wv] padded to HEAD_PAD lanes, bias as one extra row.
    wh = jnp.concatenate([wa, wv], axis=1)                       # [fc1, n_act+1]
    bh = jnp.concatenate([ba, bv], axis=1)                       # [1,   n_act+1]
    pad = HEAD_PAD - wh.shape[1]
    wh = jnp.pad(wh, ((0, 0), (0, pad)))
    bh = jnp.pad(bh, ((0, 0), (0, pad)))

    slab = jnp.concatenate([wh, bh, w1, b1.reshape(1, fc1)], axis=0)
    slab = jnp.pad(slab, ((0, _SLAB_ROWS - slab.shape[0]), (0, 0)))
    return slab                                                  # [136, 128]


def _choose_b_tile(B):
    """Batch tile: single resident block for small B; for large B a tile that
    comfortably fits v7x's 64 MiB VMEM (out block = b_tile*128*4 B, double
    buffered) and trivially fits v5e/v6e's 128 MiB."""
    for t in (1024, 512, 256, 128, 64, 32, 16, 8):
        if B % t == 0:
            return t
    return B   # tiny / odd batch: one block, no grid splitting


@jax.jit
def policy_forward(x, slab):
    """x: [B, n_state] float32; slab = pack_params(params).
    Returns (action_prob [B, n_actions], state_value [B, 1])."""
    B = x.shape[0]
    b_tile = _choose_b_tile(B)
    grid = (pl.cdiv(B, b_tile),)

    out = pl.pallas_call(
        policy_kernel,
        out_shape=jax.ShapeDtypeStruct((B, HEAD_PAD), jnp.float32),
        grid=grid,
        in_specs=[
            pl.BlockSpec((b_tile, N_STATE), lambda i: (i, 0)),
            # Same block index every step -> weight slab DMA'd once, resident.
            pl.BlockSpec((_SLAB_ROWS, HEAD_PAD), lambda i: (0, 0)),
        ],
        out_specs=pl.BlockSpec((b_tile, HEAD_PAD), lambda i: (i, 0)),
        compiler_params=pltpu.CompilerParams(
            dimension_semantics=("parallel",)),
    )(x, slab)

    # Sliced inside the same jit -> no extra eager dispatches per step.
    action_prob = out[:, :N_ACTIONS]
    state_values = out[:, N_ACTIONS:N_ACTIONS + 1]
    return action_prob, state_values


def init_params(key, n_state=N_STATE, n_actions=N_ACTIONS, fc1_dims=FC1):
    """Deterministic init mirroring nn.Linear's U(-1/sqrt(fan_in), 1/sqrt(fan_in))."""
    k1, k2, k3, k4, k5, k6 = jax.random.split(key, 6)

    def lin(kw, kb, fan_in, fan_out):
        bound = 1.0 / jnp.sqrt(jnp.float32(fan_in))
        # stored as [in, out] (transpose of PyTorch's [out, in])
        w = jax.random.uniform(kw, (fan_in, fan_out), jnp.float32, -bound, bound)
        b = jax.random.uniform(kb, (1, fan_out), jnp.float32, -bound, bound)
        return w, b

    w1, b1 = lin(k1, k2, n_state, fc1_dims)
    wa, ba = lin(k3, k4, fc1_dims, n_actions)
    wv, bv = lin(k5, k6, fc1_dims, 1)
    return (w1, b1, wa, ba, wv, bv)


def policy_ref(x, params):
    """Pure-JAX reference for verification."""
    w1, b1, wa, ba, wv, bv = params
    h = jnp.maximum(x @ w1 + b1, 0.0)
    probs = jax.nn.softmax(h @ wa + ba, axis=-1)
    value = h @ wv + bv
    return probs, value


if __name__ == "__main__":
    key = jax.random.PRNGKey(0)
    kp, kx1, kx2 = jax.random.split(key, 3)

    params = init_params(kp, N_STATE, N_ACTIONS, FC1)
    slab = pack_params(params)        # one-time packing, reused across steps

    # --- small batch (single resident block, launch-latency regime) ---------
    B = 8
    x = jax.random.normal(kx1, (B, N_STATE), jnp.float32)
    probs, value = policy_forward(x, slab)
    jax.block_until_ready((probs, value))

    probs_r, value_r = policy_ref(x, params)
    assert probs.shape == (B, N_ACTIONS) and value.shape == (B, 1)
    assert jnp.allclose(probs, probs_r, atol=1e-5, rtol=1e-5)
    assert jnp.allclose(value, value_r, atol=1e-5, rtol=1e-5)
    assert jnp.allclose(jnp.sum(probs, axis=-1), 1.0, atol=1e-5)

    # --- larger batch (exercises the parallel batch grid / resident weights) -
    B2 = 2048
    x2 = jax.random.normal(kx2, (B2, N_STATE), jnp.float32)
    probs2, value2 = policy_forward(x2, slab)
    jax.block_until_ready((probs2, value2))

    probs2_r, value2_r = policy_ref(x2, params)
    assert jnp.allclose(probs2, probs2_r, atol=1e-5, rtol=1e-5)
    assert jnp.allclose(value2, value2_r, atol=1e-5, rtol=1e-5)
    assert jnp.allclose(jnp.sum(probs2, axis=-1), 1.0, atol=1e-5)

    print("KERNEL_OK")
</pallas_src>

<mosaic_0001>
module attributes {stable_mosaic.version = 11 : i64} {
  func.func @policy_kernel(%arg0: i32, %arg1: memref<8x4xf32, #tpu.memory_space<vmem>>, %arg2: memref<136x128xf32, #tpu.memory_space<vmem>>, %arg3: memref<8x128xf32, #tpu.memory_space<vmem>>) attributes {dimension_semantics = [#tpu.dimension_semantics<parallel>], iteration_bounds = array<i64: 1>, scalar_prefetch = 0 : i64, scratch_operands = 0 : i64, tpu.core_type = #tpu.core_type<tc>, window_params = [{transform_indices = @transform_0, window_bounds = array<i64: 8, 4>}, {pipeline_mode = #tpu.pipeline_mode<synchronous>, transform_indices = @transform_1, window_bounds = array<i64: 136, 128>}, {transform_indices = @transform_2, window_bounds = array<i64: 8, 128>}]} {
    %c0 = arith.constant 0 : index
    %c0_0 = arith.constant 0 : index
    %0 = vector.load %arg1[%c0, %c0_0] : memref<8x4xf32, #tpu.memory_space<vmem>>, vector<8x1xf32>
    %c129 = arith.constant 129 : index
    %c0_1 = arith.constant 0 : index
    %1 = vector.load %arg2[%c129, %c0_1] : memref<136x128xf32, #tpu.memory_space<vmem>>, vector<1x128xf32>
    %2 = vector.broadcast %0 : vector<8x1xf32> to vector<8x128xf32>
    %3 = vector.broadcast %1 : vector<1x128xf32> to vector<8x128xf32>
    %4 = arith.mulf %2, %3 : vector<8x128xf32>
    %c133 = arith.constant 133 : index
    %c0_2 = arith.constant 0 : index
    %5 = vector.load %arg2[%c133, %c0_2] : memref<136x128xf32, #tpu.memory_space<vmem>>, vector<1x128xf32>
    %6 = vector.broadcast %5 : vector<1x128xf32> to vector<8x128xf32>
    %7 = arith.addf %4, %6 : vector<8x128xf32>
    %c0_3 = arith.constant 0 : index
    %c1 = arith.constant 1 : index
    %8 = vector.load %arg1[%c0_3, %c1] : memref<8x4xf32, #tpu.memory_space<vmem>>, vector<8x1xf32>
    %c130 = arith.constant 130 : index
    %c0_4 = arith.constant 0 : index
    %9 = vector.load %arg2[%c130, %c0_4] : memref<136x128xf32, #tpu.memory_space<vmem>>, vector<1x128xf32>
    %10 = vector.broadcast %8 : vector<8x1xf32> to vector<8x128xf32>
    %11 = vector.broadcast %9 : vector<1x128xf32> to vector<8x128xf32>
    %12 = arith.mulf %10, %11 : vector<8x128xf32>
    %13 = arith.addf %7, %12 : vector<8x128xf32>
    %c0_5 = arith.constant 0 : index
    %c2 = arith.constant 2 : index
    %14 = vector.load %arg1[%c0_5, %c2] : memref<8x4xf32, #tpu.memory_space<vmem>>, vector<8x1xf32>
    %c131 = arith.constant 131 : index
    %c0_6 = arith.constant 0 : index
    %15 = vector.load %arg2[%c131, %c0_6] : memref<136x128xf32, #tpu.memory_space<vmem>>, vector<1x128xf32>
    %16 = vector.broadcast %14 : vector<8x1xf32> to vector<8x128xf32>
    %17 = vector.broadcast %15 : vector<1x128xf32> to vector<8x128xf32>
    %18 = arith.mulf %16, %17 : vector<8x128xf32>
    %19 = arith.addf %13, %18 : vector<8x128xf32>
    %c0_7 = arith.constant 0 : index
    %c3 = arith.constant 3 : index
    %20 = vector.load %arg1[%c0_7, %c3] : memref<8x4xf32, #tpu.memory_space<vmem>>, vector<8x1xf32>
    %c132 = arith.constant 132 : index
    %c0_8 = arith.constant 0 : index
    %21 = vector.load %arg2[%c132, %c0_8] : memref<136x128xf32, #tpu.memory_space<vmem>>, vector<1x128xf32>
    %22 = vector.broadcast %20 : vector<8x1xf32> to vector<8x128xf32>
    %23 = vector.broadcast %21 : vector<1x128xf32> to vector<8x128xf32>
    %24 = arith.mulf %22, %23 : vector<8x128xf32>
    %25 = arith.addf %19, %24 : vector<8x128xf32>
    %cst = arith.constant 0.000000e+00 : f32
    %26 = vector.broadcast %cst : f32 to vector<8x128xf32>
    %27 = arith.maximumf %25, %26 : vector<8x128xf32>
    %c0_9 = arith.constant 0 : index
    %c0_10 = arith.constant 0 : index
    %28 = vector.load %arg2[%c0_9, %c0_10] : memref<136x128xf32, #tpu.memory_space<vmem>>, vector<128x128xf32>
    %cst_11 = arith.constant dense<0.000000e+00> : vector<8x128xf32>
    %29 = tpu.matmul %27, %28, %cst_11 {dimension_numbers = #tpu.dot_dimension_numbers<[1], [0], [0], [1], [0, 0, 1, 1], [], []>} : vector<8x128xf32>, vector<128x128xf32>, vector<8x128xf32> -> vector<8x128xf32>
    %c128 = arith.constant 128 : index
    %c0_12 = arith.constant 0 : index
    %30 = vector.load %arg2[%c128, %c0_12] : memref<136x128xf32, #tpu.memory_space<vmem>>, vector<1x128xf32>
    %31 = vector.broadcast %30 : vector<1x128xf32> to vector<8x128xf32>
    %32 = arith.addf %29, %31 : vector<8x128xf32>
    %33 = tpu.iota {dimensions = array<i32: 1>} : vector<8x128xi32>
    %c2_i32 = arith.constant 2 : i32
    %34 = vector.broadcast %c2_i32 : i32 to vector<8x128xi32>
    %35 = arith.cmpi slt, %33, %34 : vector<8x128xi32>
    %cst_13 = arith.constant 0xFF800000 : f32
    %36 = vector.broadcast %cst_13 : f32 to vector<8x128xf32>
    %37 = arith.select %35, %32, %36 : vector<8x128xi1>, vector<8x128xf32>
    %cst_14 = arith.constant dense<0xFF800000> : vector<8xf32>
    %38 = vector.multi_reduction <maximumf>, %37, %cst_14 [1] : vector<8x128xf32> to vector<8xf32>
    %39 = vector.shape_cast %38 : vector<8xf32> to vector<8x1xf32>
    %40 = vector.broadcast %39 : vector<8x1xf32> to vector<8x128xf32>
    %41 = arith.subf %37, %40 : vector<8x128xf32>
    %42 = math.exp %41 : vector<8x128xf32>
    %cst_15 = arith.constant dense<0.000000e+00> : vector<8xf32>
    %43 = vector.multi_reduction <add>, %42, %cst_15 [1] : vector<8x128xf32> to vector<8xf32>
    %44 = vector.shape_cast %43 : vector<8xf32> to vector<8x1xf32>
    %45 = tpu.reciprocal %44 : vector<8x1xf32> -> vector<8x1xf32>
    %46 = vector.broadcast %45 : vector<8x1xf32> to vector<8x128xf32>
    %47 = arith.mulf %42, %46 : vector<8x128xf32>
    %48 = arith.select %35, %47, %32 : vector<8x128xi1>, vector<8x128xf32>
    %c0_16 = arith.constant 0 : index
    %c0_17 = arith.constant 0 : index
    %49 = vector.load %arg3[%c0_16, %c0_17] : memref<8x128xf32, #tpu.memory_space<vmem>>, vector<8x128xf32>
    tpu.vector_store %arg3[%c0_16, %c0_17], %48 {strides = array<i32>} : memref<8x128xf32, #tpu.memory_space<vmem>>, vector<8x128xf32>,
    return
  }
  func.func @transform_0(%arg0: i32) -> (i32, i32) {
    %c0_i32 = arith.constant 0 : i32
    %c0_i32_0 = arith.constant 0 : i32
    return %arg0, %c0_i32 : i32, i32
  }
  func.func @transform_1(%arg0: i32) -> (i32, i32) {
    %c0_i32 = arith.constant 0 : i32
    %c0_i32_0 = arith.constant 0 : i32
    %c0_i32_1 = arith.constant 0 : i32
    return %c0_i32, %c0_i32_0 : i32, i32
  }
  func.func @transform_2(%arg0: i32) -> (i32, i32) {
    %c0_i32 = arith.constant 0 : i32
    %c0_i32_0 = arith.constant 0 : i32
    return %arg0, %c0_i32 : i32, i32
  }
}

</mosaic_0001>

<bundles_post_ra>
// kernel: policy_forward.1
= control target key start
LH: loop header
LB: loop body
LE: loop exit
PB: predicated region body
PF: predicated region fallthrough
CT: control target
= control target key end

     0   :  { %7 = vsyncpa [#allocation3], 0  ;;  %s286_s9 = smov [#allocation2]   ;;  %s319_s0 = inlined_call_operand.vmem [shape: f32[8,4], index: 0, kind: input, shape index: {}]   ;;  %s320_s1 = inlined_call_operand.hbm [shape: f32[136,128], index: 1, kind: input, shape index: {}]   ;;  %s321_s2 = inlined_call_operand.vmem [shape: f32[8,128], index: 2, kind: output, shape index: {}]  }
   0x1   :  { %s15_s10 = sshll.u32 %s286_s9, 4  ;;  %s16_s10 = int_to_ptr.vmem [resolvable:$true] %s15_s10 }
   0x2   :  { %s272_s11 = scalar_lea.vmem %s16_s10, 2176  ;;  %p277_p1 = scmp.lt.s32.totalorder %s16_s10, %s16_s10 }
   0x3   :  { %p273_p0 = scmp.ne.s32.totalorder %s16_s10, %s272_s11  ;;  %p278_p2 = scmp.lt.s32.totalorder %s272_s11, %s272_s11 }
   0x5   :  { %p279_p3 = por %p278_p2, %p277_p1 }
   0x7   :  { %p280_p4 = pnand %p279_p3, %p273_p0 }
   0x9   :  { %283 = shalt.err (!%p280_p4)
}
   0xa   :  { %s287_s12 = smov 128   ;;  %s288_s13 = smov 8  }
   0xb   :  { %21 = dma.hbm_to_vmem [thread:$0]  %s320_s1, 2176, %s16_s10, [#allocation3], %s287_s12, %s287_s12, %s288_s13  }
   0xc   :  { %284 = dma.done.wait [#allocation3], 2176  }
   0xd   :  { %285 = vsyncadd [#allocation3], 4294965120  ;;  %v289_v0 = vmov 0   ;;  %v290_v1 = vmov 2   ;;  %v291_v2 = vmov 0.0   ;;  %v25_v3 = vld [vmem:[%s319_s0] sm:$0xff]  ;;  %v168_v40 = vlaneseq }
   0xe   :  { %255 = vset.pattern.permute.xlu0 %v289_v0  ;;  %257 = vset.pattern.permute.xlu1 %v290_v1  ;;  %v92_v4 = vld [vmem:[#allocation2 + $0x78] sm:$0xff]  ;;  %v91_v5 = vld [vmem:[#allocation2 + $0x70] sm:$0xff]  ;;  %v292_v6 = vmov 1   ;;  %v293_v7 = vmov 3   ;;  %v90_v8 = vld [vmem:[#allocation2 + $0x68] sm:$0xff]  ;;  %vm294_vm0 = vmmov 0  }
   0xf   :  { %211 = vmatprep.subr.mxu0 %v291_v2  ;;  %29 = vperm.xlu0 %255, %v25_v3   ;;  %v89_v9 = vld [vmem:[#allocation2 + $0x60] sm:$0xff]  ;;  %v88_v10 = vld [vmem:[#allocation2 + $0x58] sm:$0xff]  ;;  %v87_v11 = vld [vmem:[#allocation2 + $0x50] sm:$0xff]  ;;  %v169_v41 = vand.u32 127, %v168_v40 }
  0x10   :  { %56 = vperm.xlu1 %257, %v25_v3   ;;  %212 = vmatpush3.msra.mxu0 %v92_v4  ;;  %v86_v12 = vld [vmem:[#allocation2 + $0x48] sm:$0xff]  ;;  %v85_v13 = vld [vmem:[#allocation2 + $0x40] sm:$0xff]  ;;  %v84_v14 = vld [vmem:[#allocation2 + $0x38] sm:$0xff] }
  0x11   :  { %213 = vmatprep.subr.mxu0 %v291_v2  ;;  %243 = vmatprep.mubr.msk.f32.mxu0 %vm294_vm0, %v291_v2  ;;  %v83_v15 = vld [vmem:[#allocation2 + $0x30] sm:$0xff]  ;;  %v82_v16 = vld [vmem:[#allocation2 + $0x28] sm:$0xff]  ;;  %v81_v17 = vld [vmem:[#allocation2 + $0x20] sm:$0xff]  ;;  %vm170_vm1 = vcmp.lt.s32.totalorder %v169_v41, 2 }
  0x12   :  { %214 = vmatpush3.msra.mxu0 %v91_v5  ;;  %v80_v18 = vld [vmem:[#allocation2 + $0x18] sm:$0xff]  ;;  %v79_v19 = vld [vmem:[#allocation2 + $0x10] sm:$0xff]  ;;  %v78_v20 = vld [vmem:[#allocation2 + $0x8] sm:$0xff] }
  0x13   :  { %256 = vset.pattern.permute.xlu0 %v292_v6  ;;  %215 = vmatprep.subr.mxu0 %v291_v2  ;;  %v77_v21 = vld [vmem:[#allocation2] sm:$0xff] }
  0x14   :  { %258 = vset.pattern.permute.xlu1 %v293_v7  ;;  %45 = vperm.xlu0 %256, %v25_v3   ;;  %v188_v22 = vld [vmem:[#allocation2 + $0x81] ss:$0 sm:$0xff]  ;;  %v189_v26 = vld [vmem:[#allocation2 + $0x85] ss:$0 sm:$0xff]  ;;  %v190_v27 = vld [vmem:[#allocation2 + $0x82] ss:$0 sm:$0xff] }
  0x15   :  { %67 = vperm.xlu1 %258, %v25_v3   ;;  %216 = vmatpush3.msra.mxu0 %v90_v8  ;;  %v191_v28 = vld [vmem:[#allocation2 + $0x83] ss:$0 sm:$0xff]  ;;  %v192_v30 = vld [vmem:[#allocation2 + $0x84] ss:$0 sm:$0xff]  ;;  %v193_v42 = vld [vmem:[#allocation2 + $0x80] ss:$0 sm:$0xff] }
  0x16   :  { %217 = vmatprep.subr.mxu0 %v291_v2 }
  0x17   :  { %218 = vmatpush3.msra.mxu0 %v89_v9 }
  0x18   :  { %259 = vset.pattern.permute.xlu0 %v293_v7  ;;  %219 = vmatprep.subr.mxu0 %v291_v2 }
  0x19   :  { %220 = vmatpush3.msra.mxu0 %v88_v10 }
  0x1a   :  { %221 = vmatprep.subr.mxu0 %v291_v2 }
  0x1b   :  { %222 = vmatpush3.msra.mxu0 %v87_v11 }
  0x1c   :  { %223 = vmatprep.subr.mxu0 %v291_v2 }
  0x1d   :  { %224 = vmatpush3.msra.mxu0 %v86_v12 }
  0x1e   :  { %225 = vmatprep.subr.mxu0 %v291_v2 }
  0x1f   :  { %226 = vmatpush3.msra.mxu0 %v85_v13 }
  0x20   :  { %227 = vmatprep.subr.mxu0 %v291_v2 }
  0x21   :  { %228 = vmatpush3.msra.mxu0 %v84_v14 }
  0x22   :  { %229 = vmatprep.subr.mxu0 %v291_v2 }
  0x23   :  { %230 = vmatpush3.msra.mxu0 %v83_v15 }
  0x24   :  { %231 = vmatprep.subr.mxu0 %v291_v2 }
  0x25   :  { %232 = vmatpush3.msra.mxu0 %v82_v16 }
  0x26   :  { %233 = vmatprep.subr.mxu0 %v291_v2 }
  0x27   :  { %234 = vmatpush3.msra.mxu0 %v81_v17 }
  0x28   :  { %235 = vmatprep.subr.mxu0 %v291_v2 }
  0x29   :  { %236 = vmatpush3.msra.mxu0 %v80_v18 }
  0x2a   :  { %237 = vmatprep.subr.mxu0 %v291_v2 }
  0x2b   :  { %238 = vmatpush3.msra.mxu0 %v79_v19 }
  0x2c   :  { %239 = vmatprep.subr.mxu0 %v291_v2 }
  0x2d   :  { %240 = vmatpush3.msra.mxu0 %v78_v20 }
  0x2e   :  { %241 = vmatprep.subr.mxu0 %v291_v2 }
  0x2f   :  { %242 = vmatpush3.msra.mxu0 %v77_v21 }
  0x8a   :  { %v30_v23 = vpop.permute.xlu0 %29 }
  0x8b   :  { %v57_v24 = vpop.permute.xlu1 %56  ;;  %v36_v25 = vmul.f32 %v188_v22, %v30_v23 }
  0x8c   :  { %v63_v34 = vmul.f32 %v191_v28, %v57_v24 }
  0x8d   :  { %v42_v32 = vadd.f32 %v189_v26, %v36_v25 }
  0x8f   :  { %v46_v29 = vpop.permute.xlu0 %45 }
  0x90   :  { %v68_v31 = vpop.permute.xlu1 %67  ;;  %v52_v33 = vmul.f32 %v190_v27, %v46_v29 }
  0x91   :  { %v74_v36 = vmul.f32 %v192_v30, %v68_v31 }
  0x92   :  { %v53_v35 = vadd.f32 %v52_v33, %v42_v32 }
  0x94   :  { %v64_v37 = vadd.f32 %v63_v34, %v53_v35 }
  0x96   :  { %v75_v38 = vadd.f32 %v74_v36, %v64_v37 }
  0x98   :  { %v76_v39 = vmax.f32 %v75_v38, 0.0 }
  0x9a   :  { %244 = vmatmul.mubr.f32.vlgmr.msra.gmra.mxu0 %v76_v39 }
 0x15a   :  { %v164_v43 = vpop.f32.mrf.mxu0 }
 0x15b   :  { %v165_v44 = vadd.f32 %v193_v42, %v164_v43 }
 0x15c   :  { %v245_v45 = vpop.f32.mrf.mxu0 }
 0x15d   :  { %v171_v46 = vsel %vm170_vm1, %v165_v44, -inf }
 0x15e   :  { %172 = vmax.xlane.f32.xlu1 %v171_v46 }
 0x1e7   :  { %v173_v47 = vpop.xlane.xlu1 %172 }
 0x1e8   :  { %v174_v48 = vsub.f32 %v171_v46, %v173_v47 }
 0x1ea   :  { %v175_v49 = vmul.f32 1.442695, %v174_v48 }
 0x1ec   :  { %260 = vpow2.f32 %v175_v49 }
 0x1f9   :  { %v261_v50 = vpop.eup %260 }
 0x1fa   :  { %177 = vadd.xlane.f32.xlu0 %v261_v50 }
 0x283   :  { %v178_v51 = vpop.xlane.xlu0 %177 }
 0x284   :  { %262 = vrcp.f32 %v178_v51 }
 0x291   :  { %v263_v52 = vpop.eup %262 }
 0x292   :  { %v180_v53 = vmul.f32 %v263_v52, %v261_v50 }
 0x294   :  { %v181_v54 = vsel %vm170_vm1, %v180_v53, %v165_v44 }
 0x295   :  { %182 = vst [vmem:[%s321_s2] sm:$0xff] %v181_v54 }
 0x296   :  { %187 = vsyncpa [#allocation3], 1 }

</bundles_post_ra>
